<compile_context>
chip_gen: v5e
topology: v5e:2x2
jax: 0.10.0
libtpu: 0.0.40
codegen_flags: <defaults>
</compile_context>

<pallas_src>
import functools

import jax
import jax.numpy as jnp
from jax.experimental import pallas as pl
from jax.experimental.pallas import tpu as pltpu


# ----------------------------------------------------------------------------
# Kernel
# ----------------------------------------------------------------------------
def _scse_kernel(x_ref, cse_ref, wsse_ref, bsse_ref, o_ref):
    """One (batch, spatial-tile) block per grid step.

    x_ref    : (1, C, HWt)  activations, lane-dense along HWt
    cse_ref  : (1, C, 1)    precomputed channel gate (sigmoid already applied)
    wsse_ref : (C, 1)       sSE 1x1-conv weight
    bsse_ref : (1, 1)       sSE bias
    o_ref    : (1, C, HWt)
    """
    x = x_ref[0].astype(jnp.float32)                    # (C, HWt)
    cse = cse_ref[0]                                    # (C, 1)   broadcast along lanes

    # sSE: per-pixel gate = sigmoid(sum_c x[c, p] * w[c] + b)  — VPU mul + sublane reduce.
    sse = jax.nn.sigmoid(
        jnp.sum(x * wsse_ref[...], axis=0, keepdims=True) + bsse_ref[...])  # (1, HWt)

    # x*cSE + x*sSE == x*(cSE + sSE)
    o_ref[0] = (x * (cse + sse)).astype(o_ref.dtype)


# ----------------------------------------------------------------------------
# Wrapper
# ----------------------------------------------------------------------------
def _choose_hw_tile(hw, c, itemsize, target_bytes=4 << 20):
    """Largest multiple-of-128 divisor of `hw` whose (C, tile) block stays under budget."""
    if hw % 128 != 0:
        return hw                                   # full-extent block satisfies BlockSpec rule
    max_tile = max(128, (target_bytes // max(1, c * itemsize)) // 128 * 128)
    tile = min(hw, max_tile)
    while hw % tile != 0:
        tile -= 128
    return tile


@jax.jit
def scse_pallas(x, params):
    """x: (N, C, H, W) (PyTorch NCHW).  Returns (N, C, H, W)."""
    N, C, H, W = x.shape
    HW = H * W
    x2 = x.reshape(N, C, HW)                        # free relayout of contiguous NCHW

    # --- cSE squeeze path hoisted to plain JAX (tiny; M=1 matmuls waste the MXU) ---------
    mean = jnp.mean(x2.astype(jnp.float32), axis=2)                      # (N, C)
    hid = jax.nn.relu(mean @ params["w_cse1"] + params["b_cse1"])        # (N, Cr)
    cse = jax.nn.sigmoid(hid @ params["w_cse2"] + params["b_cse2"])      # (N, C)
    cse = cse[:, :, None].astype(jnp.float32)                            # (N, C, 1)

    w_sse = params["w_sse"].reshape(C, 1).astype(jnp.float32)
    b_sse = params["b_sse"].reshape(1, 1).astype(jnp.float32)

    hw_t = _choose_hw_tile(HW, C, jnp.dtype(x.dtype).itemsize)
    n_tiles = HW // hw_t

    out2 = pl.pallas_call(
        _scse_kernel,
        out_shape=jax.ShapeDtypeStruct((N, C, HW), x.dtype),
        grid=(N, n_tiles),
        in_specs=[
            pl.BlockSpec((1, C, hw_t), lambda n, t: (n, 0, t)),
            pl.BlockSpec((1, C, 1), lambda n, t: (n, 0, 0)),
            pl.BlockSpec((C, 1), lambda n, t: (0, 0)),
            pl.BlockSpec((1, 1), lambda n, t: (0, 0)),
        ],
        out_specs=pl.BlockSpec((1, C, hw_t), lambda n, t: (n, 0, t)),
        compiler_params=pltpu.CompilerParams(
            dimension_semantics=("parallel", "parallel")),
    )(x2, cse, w_sse, b_sse)

    return out2.reshape(N, C, H, W)


class SCSEModulePallas:
    """Pallas counterpart of SCSEModule (eval-mode forward)."""

    def __init__(self, in_channels, reduction=16, key=None):
        self.params = init_scse_params(key, in_channels, reduction)

    def __call__(self, x):
        return scse_pallas(x, self.params)


# ----------------------------------------------------------------------------
# Deterministic parameter initialization (fresh synthetic weights)
# ----------------------------------------------------------------------------
def init_scse_params(key, C, reduction=16):
    Cr = max(1, C // reduction)
    ks = jax.random.split(key, 6)
    return dict(
        w_cse1=0.1 * jax.random.normal(ks[0], (C, Cr), jnp.float32),
        b_cse1=0.1 * jax.random.normal(ks[1], (Cr,), jnp.float32),
        w_cse2=0.1 * jax.random.normal(ks[2], (Cr, C), jnp.float32),
        b_cse2=0.1 * jax.random.normal(ks[3], (C,), jnp.float32),
        w_sse=0.1 * jax.random.normal(ks[4], (C,), jnp.float32),
        b_sse=0.1 * jax.random.normal(ks[5], (), jnp.float32),
    )


# ----------------------------------------------------------------------------
# Pure-JAX reference (for correctness check)
# ----------------------------------------------------------------------------
def scse_reference(x, p):
    mean = jnp.mean(x, axis=(2, 3))                                       # (N, C)
    hid = jax.nn.relu(mean @ p["w_cse1"] + p["b_cse1"])
    cse = jax.nn.sigmoid(hid @ p["w_cse2"] + p["b_cse2"])                 # (N, C)
    sse = jax.nn.sigmoid(jnp.einsum("nchw,c->nhw", x, p["w_sse"]) + p["b_sse"])
    return x * cse[:, :, None, None] + x * sse[:, None, :, :]


# ----------------------------------------------------------------------------
# Main
# ----------------------------------------------------------------------------
if __name__ == "__main__":
    key = jax.random.PRNGKey(0)
    k_x, k_p = jax.random.split(key)

    N, C, H, W = 2, 32, 16, 16          # reduction=16 -> bottleneck of 2
    x = jax.random.normal(k_x, (N, C, H, W), jnp.float32)

    mod = SCSEModulePallas(in_channels=C, reduction=16, key=k_p)
    out = jax.block_until_ready(mod(x))

    ref = jax.block_until_ready(scse_reference(x, mod.params))
    assert out.shape == (N, C, H, W)
    err = jnp.max(jnp.abs(out - ref))
    assert jnp.allclose(out, ref, atol=1e-5, rtol=1e-5), f"max abs err {err}"

    print("KERNEL_OK")
</pallas_src>

<mosaic_0001>
module attributes {stable_mosaic.version = 11 : i64} {
  func.func @_scse_kernel(%arg0: i32, %arg1: i32, %arg2: memref<1x32x256xf32, #tpu.memory_space<vmem>>, %arg3: memref<1x32x1xf32, #tpu.memory_space<vmem>>, %arg4: memref<32x1xf32, #tpu.memory_space<vmem>>, %arg5: memref<1x1xf32, #tpu.memory_space<vmem>>, %arg6: memref<1x32x256xf32, #tpu.memory_space<vmem>>) attributes {dimension_semantics = [#tpu.dimension_semantics<parallel>, #tpu.dimension_semantics<parallel>], iteration_bounds = array<i64: 2, 1>, scalar_prefetch = 0 : i64, scratch_operands = 0 : i64, tpu.core_type = #tpu.core_type<tc>, window_params = [{transform_indices = @transform_0, window_bounds = array<i64: 1, 32, 256>}, {transform_indices = @transform_1, window_bounds = array<i64: 1, 32, 1>}, {pipeline_mode = #tpu.pipeline_mode<synchronous>, transform_indices = @transform_2, window_bounds = array<i64: 32, 1>}, {pipeline_mode = #tpu.pipeline_mode<synchronous>, transform_indices = @transform_3, window_bounds = array<i64: 1, 1>}, {transform_indices = @transform_4, window_bounds = array<i64: 1, 32, 256>}]} {
    %c0 = arith.constant 0 : index
    %c0_0 = arith.constant 0 : index
    %c0_1 = arith.constant 0 : index
    %0 = vector.load %arg2[%c0, %c0_0, %c0_1] : memref<1x32x256xf32, #tpu.memory_space<vmem>>, vector<1x32x256xf32>
    %1 = vector.shape_cast %0 : vector<1x32x256xf32> to vector<32x256xf32>
    %c0_2 = arith.constant 0 : index
    %c0_3 = arith.constant 0 : index
    %c0_4 = arith.constant 0 : index
    %2 = vector.load %arg3[%c0_2, %c0_3, %c0_4] : memref<1x32x1xf32, #tpu.memory_space<vmem>>, vector<1x32x1xf32>
    %3 = vector.shape_cast %2 : vector<1x32x1xf32> to vector<32x1xf32>
    %c0_5 = arith.constant 0 : index
    %c0_6 = arith.constant 0 : index
    %4 = vector.load %arg4[%c0_5, %c0_6] : memref<32x1xf32, #tpu.memory_space<vmem>>, vector<32x1xf32>
    %5 = vector.broadcast %4 : vector<32x1xf32> to vector<32x256xf32>
    %6 = arith.mulf %1, %5 : vector<32x256xf32>
    %cst = arith.constant dense<0.000000e+00> : vector<256xf32>
    %7 = vector.multi_reduction <add>, %6, %cst [0] : vector<32x256xf32> to vector<256xf32>
    %8 = vector.shape_cast %7 : vector<256xf32> to vector<1x256xf32>
    %c0_7 = arith.constant 0 : index
    %c0_8 = arith.constant 0 : index
    %9 = vector.load %arg5[%c0_7, %c0_8] : memref<1x1xf32, #tpu.memory_space<vmem>>, vector<1x1xf32>
    %10 = vector.broadcast %9 : vector<1x1xf32> to vector<1x256xf32>
    %11 = arith.addf %8, %10 : vector<1x256xf32>
    %12 = arith.negf %11 : vector<1x256xf32>
    %13 = math.exp %12 : vector<1x256xf32>
    %cst_9 = arith.constant 1.000000e+00 : f32
    %14 = vector.broadcast %cst_9 : f32 to vector<1x256xf32>
    %15 = arith.addf %14, %13 : vector<1x256xf32>
    %16 = arith.divf %14, %15 : vector<1x256xf32>
    %17 = vector.broadcast %3 : vector<32x1xf32> to vector<32x256xf32>
    %18 = vector.broadcast %16 : vector<1x256xf32> to vector<32x256xf32>
    %19 = arith.addf %17, %18 : vector<32x256xf32>
    %20 = arith.mulf %1, %19 : vector<32x256xf32>
    %c0_10 = arith.constant 0 : index
    %c0_11 = arith.constant 0 : index
    %c0_12 = arith.constant 0 : index
    %21 = vector.load %arg6[%c0_10, %c0_11, %c0_12] : memref<1x32x256xf32, #tpu.memory_space<vmem>>, vector<1x32x256xf32>
    %22 = vector.shape_cast %21 : vector<1x32x256xf32> to vector<32x256xf32>
    %23 = vector.shape_cast %20 : vector<32x256xf32> to vector<1x32x256xf32>
    tpu.vector_store %arg6[%c0_10, %c0_11, %c0_12], %23 {strides = array<i32>} : memref<1x32x256xf32, #tpu.memory_space<vmem>>, vector<1x32x256xf32>,
    return
  }
  func.func @transform_0(%arg0: i32, %arg1: i32) -> (i32, i32, i32) {
    %c0_i32 = arith.constant 0 : i32
    %c0_i32_0 = arith.constant 0 : i32
    return %arg0, %c0_i32, %arg1 : i32, i32, i32
  }
  func.func @transform_1(%arg0: i32, %arg1: i32) -> (i32, i32, i32) {
    %c0_i32 = arith.constant 0 : i32
    %c0_i32_0 = arith.constant 0 : i32
    %c0_i32_1 = arith.constant 0 : i32
    return %arg0, %c0_i32, %c0_i32_0 : i32, i32, i32
  }
  func.func @transform_2(%arg0: i32, %arg1: i32) -> (i32, i32) {
    %c0_i32 = arith.constant 0 : i32
    %c0_i32_0 = arith.constant 0 : i32
    %c0_i32_1 = arith.constant 0 : i32
    return %c0_i32, %c0_i32_0 : i32, i32
  }
  func.func @transform_3(%arg0: i32, %arg1: i32) -> (i32, i32) {
    %c0_i32 = arith.constant 0 : i32
    %c0_i32_0 = arith.constant 0 : i32
    %c0_i32_1 = arith.constant 0 : i32
    return %c0_i32, %c0_i32_0 : i32, i32
  }
  func.func @transform_4(%arg0: i32, %arg1: i32) -> (i32, i32, i32) {
    %c0_i32 = arith.constant 0 : i32
    %c0_i32_0 = arith.constant 0 : i32
    return %arg0, %c0_i32, %arg1 : i32, i32, i32
  }
}

</mosaic_0001>

<bundles_post_ra>
// kernel: scse_pallas.1
= control target key start
LH: loop header
LB: loop body
LE: loop exit
PB: predicated region body
PF: predicated region fallthrough
CT: control target
= control target key end

     0   :  { %s618_s17 = smov 0   ;;  %s620_s18 = smov 0   ;;  %s706_s0 = inlined_call_operand.vmem [shape: f32[2,32,256], index: 0, kind: input, shape index: {}]   ;;  %s707_s1 = inlined_call_operand.vmem [shape: f32[2,32,1], index: 1, kind: input, shape index: {}]   ;;  %s708_s2 = inlined_call_operand.vmem [shape: f32[32,1], index: 2, kind: input, shape index: {}]   ;;  %s709_s3 = inlined_call_operand.<no memory space> [shape: f32[1,1], index: 3, kind: input, shape index: {}]   ;;  %s710_s4 = inlined_call_operand.vmem [shape: f32[2,32,256], index: 4, kind: output, shape index: {}]  }
   0x1   :  { %v9_v0 = vstv %s709_s3  ;;  %s622_s19 = smov 0  }
   0x2   :  { %10 = vst [vmem:[#allocation2] sm:$0x1] %v9_v0 }
   0x3 LB: > { %s28_s3 = sadd.s32 1, %s583_s18  ;;  %p515_p0 = scmp.ge.s32.totalorder %s587_s19, 1  ;;  %s587_s19 = sphi %s622_s19, %s16_s19   ;;  %s583_s18 = sphi %s620_s18, %s712_s18   ;;  %s579_s17 = sphi %s618_s17, %s711_s17  }
   0x4   : > { %p30_p1 = scmp.ge.s32.totalorder %s28_s3, 2  ;;  %p195_p2 = scmp.lt.s32.totalorder %s587_s19, 3 }
   0x6   : > { %s714_s3 = smov (%p30_p1, %s28_s3), 0  ;;  %p196_p3 = pnand %p515_p0, %p195_p2 }
   0x7   : > { %p235_p4 = scmp.lt.s32.totalorder (!%p196_p3), %s579_s17, 1 }
   0x8   : > { %199 = sbr.rel (%p196_p3) target bundleno = 200 (0xc8), region = 36 }
   0xd   : > { %v273_v1 = vld [vmem:[%s708_s2 + $0x10] sm:$0xff]  ;;  %v271_v2 = vld [vmem:[%s708_s2] sm:$0xff]  ;;  %v589_v3 = vmov 0   ;;  %s716_s17 = smov (!%p235_p4, %s579_s17), 1  ;;  %v274_v5 = vld [vmem:[%s708_s2 + $0x18] sm:$0xff] }
   0xe   : > { %555 = vset.pattern.permute.xlu1 %v589_v3  ;;  %554 = vset.pattern.permute.xlu0 %v589_v3  ;;  %v321_v4 = vld [vmem:[#allocation2] sm:$0x1]  ;;  %s527_s24 = sshll.u32 %s716_s17, 5  ;;  %v272_v6 = vld [vmem:[%s708_s2 + $0x8] sm:$0xff]  ;;  %s526_s6 = sshll.u32 %s716_s17, 6 }
   0xf   : > { %287 = vperm.xlu1 %555, %v273_v1   ;;  %277 = vperm.xlu0 %554, %v271_v2   ;;  %s248_s5 = scalar_lea.vmem %s707_s1, %s527_s24  ;;  %s242_s9 = scalar_lea.vmem %s706_s0, %s526_s6 }
  0x10   : > { %556 = vset.pattern.permute.xlu2 %v589_v3  ;;  %v267_v7 = vld [vmem:[%s248_s5] sm:$0xff]  ;;  %v269_v8 = vld [vmem:[%s248_s5 + $0x10] sm:$0xff]  ;;  %v268_v9 = vld [vmem:[%s248_s5 + $0x8] sm:$0xff]  ;;  %s257_s12 = scalar_lea.vmem %s710_s4, %s526_s6 }
  0x11   : > { %324 = vperm.xlu2 %556, %v321_v4   ;;  %v270_v10 = vld [vmem:[%s248_s5 + $0x18] sm:$0xff]  ;;  %v660_v13 = vld [vmem:[%s242_s9] sm:$0xff]  ;;  %v662_v14 = vld [vmem:[%s242_s9 + $0x8] sm:$0xff] }
  0x12   : > { %v664_v15 = vld [vmem:[%s242_s9 + $0x10] sm:$0xff]  ;;  %v666_v16 = vld [vmem:[%s242_s9 + $0x18] sm:$0xff]  ;;  %v668_v17 = vld [vmem:[%s242_s9 + $0x20] sm:$0xff] }
  0x13   : > { %v670_v18 = vld [vmem:[%s242_s9 + $0x28] sm:$0xff]  ;;  %v676_v25 = vld [vmem:[%s242_s9 + $0x30] sm:$0xff]  ;;  %v678_v26 = vld [vmem:[%s242_s9 + $0x38] sm:$0xff] }
  0x17   : > { %292 = vperm.xlu1 %555, %v274_v5   ;;  %282 = vperm.xlu0 %554, %v272_v6  }
  0x19   : > { %370 = vperm.xlu2 %556, %v267_v7  }
  0x1f   : > { %380 = vperm.xlu1 %555, %v269_v8   ;;  %375 = vperm.xlu0 %554, %v268_v9  }
  0x21   : > { %385 = vperm.xlu2 %556, %v270_v10  }
  0x6b   : > { %v325_v45 = vpop.permute.xlu2 %324 }
  0x6c   : > { %v327_v48 = vperm.slane %v325_v45, 0 }
  0x73   : > { %v371_v63 = vpop.permute.xlu2 %370 }
  0x81   : > { %v288_v11 = vpop.permute.xlu1 %287  ;;  %v278_v12 = vpop.permute.xlu0 %277 }
  0x82   : > { %v295_v20 = vmul.f32 %v278_v12, %v660_v13  ;;  %v296_v21 = vmul.f32 %v278_v12, %v662_v14  ;;  %v299_v27 = vmul.f32 %v288_v11, %v668_v17  ;;  %v300_v28 = vmul.f32 %v288_v11, %v670_v18 }
  0x89   : > { %v283_v19 = vpop.permute.xlu0 %282  ;;  %v293_v24 = vpop.permute.xlu1 %292 }
  0x8a   : > { %v297_v22 = vmul.f32 %v283_v19, %v664_v15  ;;  %v298_v23 = vmul.f32 %v283_v19, %v666_v16  ;;  %v301_v31 = vmul.f32 %v293_v24, %v676_v25  ;;  %v302_v32 = vmul.f32 %v293_v24, %v678_v26 }
  0x8c   : > { %v303_v29 = vadd.f32 %v297_v22, %v295_v20  ;;  %v312_v30 = vadd.f32 %v298_v23, %v296_v21 }
  0x8e   : > { %v304_v33 = vadd.f32 %v303_v29, %v299_v27  ;;  %v313_v34 = vadd.f32 %v312_v30, %v300_v28 }
  0x90   : > { %v305_v35 = vadd.f32 %v304_v33, %v301_v31  ;;  %v314_v36 = vadd.f32 %v313_v34, %v302_v32  ;;  %v386_v32 = vpop.permute.xlu2 %385 }
  0x91   : > { %v381_v19 = vpop.permute.xlu1 %380  ;;  %v376_v22 = vpop.permute.xlu0 %375 }
  0x92   : > { %v306_v37 = vrot.slane %v305_v35, 4  ;;  %v315_v38 = vrot.slane %v314_v36, 4 }
  0x94   : > { %v307_v39 = vadd.f32 %v306_v37, %v305_v35  ;;  %v316_v40 = vadd.f32 %v315_v38, %v314_v36 }
  0x96   : > { %v308_v41 = vrot.slane %v307_v39, 2  ;;  %v317_v42 = vrot.slane %v316_v40, 2 }
  0x98   : > { %v309_v43 = vadd.f32 %v308_v41, %v307_v39  ;;  %v318_v44 = vadd.f32 %v317_v42, %v316_v40 }
  0x9a   : > { %v310_v46 = vrot.slane %v309_v43, 1  ;;  %v319_v47 = vrot.slane %v318_v44, 1 }
  0x9c   : > { %v311_v49 = vadd.f32 %v310_v46, %v309_v43  ;;  %v320_v50 = vadd.f32 %v319_v47, %v318_v44 }
  0x9e   : > { %v328_v51 = vadd.f32 %v327_v48, %v311_v49  ;;  %v329_v52 = vadd.f32 %v327_v48, %v320_v50 }
  0xa0   : > { %v522_v53 = vmul.f32 -1.442695, %v328_v51  ;;  %v523_v54 = vmul.f32 -1.442695, %v329_v52 }
  0xa2   : > { %557 = vpow2.f32 %v522_v53 }
  0xa3   : > { %559 = vpow2.f32 %v523_v54 }
  0xa8   : > { %v558_v55 = vpop.eup %557 }
  0xa9   : > { %v560_v56 = vpop.eup %559  ;;  %v336_v57 = vadd.f32 1.0, %v558_v55 }
  0xaa   : > { %v337_v58 = vadd.f32 1.0, %v560_v56 }
  0xab   : > { %561 = vrcp.f32 %v336_v57  ;;  %v349_v1 = vand.u32 2147483648, %v336_v57  ;;  %v347_v4 = vand.u32 2147483647, %v336_v57  ;;  %vm343_vm2 = vweird.f32 %v336_v57 }
  0xac   : > { %563 = vrcp.f32 %v337_v58  ;;  %v364_v5 = vand.u32 2147483648, %v337_v58  ;;  %v362_v7 = vand.u32 2147483647, %v337_v58  ;;  %vm358_vm4 = vweird.f32 %v337_v58 }
  0xad   : > { %v350_v9 = vor.u32 1.1754944e-38, %v349_v1  ;;  %vm348_vm5 = vcmp.eq.f32.partialorder %v347_v4, 8.507059e+37 }
  0xae   : > { %v365_v12 = vor.u32 1.1754944e-38, %v364_v5  ;;  %vm363_vm7 = vcmp.eq.f32.partialorder %v362_v7, 8.507059e+37 }
  0xb1   : > { %v562_v59 = vpop.eup %561 }
  0xb2   : > { %v564_v60 = vpop.eup %563  ;;  %v339_v61 = vmul.f32 %v562_v59, %v336_v57  ;;  %vm344_vm0 = vweird.f32 %v562_v59 }
  0xb3   : > { %v354_v62 = vmul.f32 %v564_v60, %v337_v58  ;;  %vm359_vm1 = vweird.f32 %v564_v60  ;;  %vm345_vm3 = vmor %vm343_vm2, %vm344_vm0 }
  0xb4   : > { %v340_v0 = vsub.f32 1.0, %v339_v61  ;;  %vm360_vm6 = vmor %vm358_vm4, %vm359_vm1 }
  0xb5   : > { %v355_v2 = vsub.f32 1.0, %v354_v62 }
  0xb6   : > { %v341_v3 = vmul.f32 %v562_v59, %v340_v0 }
  0xb7   : > { %v356_v6 = vmul.f32 %v564_v60, %v355_v2 }
  0xb8   : > { %v342_v8 = vadd.f32 %v562_v59, %v341_v3 }
  0xb9   : > { %v357_v10 = vadd.f32 %v564_v60, %v356_v6 }
  0xba   : > { %v346_v11 = vsel %vm345_vm3, %v562_v59, %v342_v8 }
  0xbb   : > { %v351_v20 = vsel %vm348_vm5, %v350_v9, %v346_v11  ;;  %v361_v21 = vsel %vm360_vm6, %v564_v60, %v357_v10 }
  0xbc   : > { %v366_v23 = vsel %vm363_vm7, %v365_v12, %v361_v21  ;;  %v392_v24 = vadd.f32 %v381_v19, %v351_v20  ;;  %v390_v27 = vadd.f32 %v376_v22, %v351_v20  ;;  %v388_v28 = vadd.f32 %v371_v63, %v351_v20 }
  0xbd   : > { %v393_v29 = vadd.f32 %v381_v19, %v366_v23  ;;  %v391_v30 = vadd.f32 %v376_v22, %v366_v23  ;;  %v389_v31 = vadd.f32 %v371_v63, %v366_v23  ;;  %v394_v35 = vadd.f32 %v386_v32, %v351_v20 }
  0xbe   : > { %v400_v33 = vmul.f32 %v392_v24, %v668_v17  ;;  %v398_v34 = vmul.f32 %v390_v27, %v664_v15  ;;  %v395_v38 = vadd.f32 %v386_v32, %v366_v23  ;;  %v396_v39 = vmul.f32 %v388_v28, %v660_v13 }
  0xbf   : > { %v401_v36 = vmul.f32 %v393_v29, %v670_v18  ;;  %v399_v37 = vmul.f32 %v391_v30, %v666_v16  ;;  %v397_v40 = vmul.f32 %v389_v31, %v662_v14  ;;  %v402_v41 = vmul.f32 %v394_v35, %v676_v25 }
  0xc0   : > { %408 = vst [vmem:[%s257_s12 + $0x20] sm:$0xff] %v400_v33  ;;  %v403_v17 = vmul.f32 %v395_v38, %v678_v26 }
  0xc1   : > { %409 = vst [vmem:[%s257_s12 + $0x28] sm:$0xff] %v401_v36 }
  0xc2   : > { %406 = vst [vmem:[%s257_s12 + $0x10] sm:$0xff] %v398_v34 }
  0xc3   : > { %407 = vst [vmem:[%s257_s12 + $0x18] sm:$0xff] %v399_v37 }
  0xc4   : > { %404 = vst [vmem:[%s257_s12] sm:$0xff] %v396_v39 }
  0xc5   : > { %405 = vst [vmem:[%s257_s12 + $0x8] sm:$0xff] %v397_v40 }
  0xc6   : > { %410 = vst [vmem:[%s257_s12 + $0x30] sm:$0xff] %v402_v41 }
  0xc7   : > { %411 = vst [vmem:[%s257_s12 + $0x38] sm:$0xff] %v403_v17 }
  0xc8 PF: > { %s16_s19 = sadd.s32 1, %s587_s19   ;;  %s711_s17 = smov %s583_s18 }
  0xc9   : > { %p13_p5 = scmp.ge.s32.totalorder %s16_s19, 4   ;;  %s712_s18 = smov %s714_s3 }
  0xcb   :  { %15 = sbr.rel (!%p13_p5) target bundleno = 3 (0x3), region = 69 }

</bundles_post_ra>
